<compile_context>
chip_gen: v7x
topology: tpu7x:2x2x1
jax: 0.10.0
libtpu: 0.0.40
codegen_flags: <defaults>
</compile_context>

<pallas_src>
import jax
import jax.numpy as jnp
from jax import lax
from jax.experimental import pallas as pl
from jax.experimental.pallas import tpu as pltpu


def _device_kind():
    try:
        return jax.devices()[0].device_kind.lower()
    except Exception:
        return ""


def _vmem_tile_bytes(rows, cols, itemsize):
    """Approximate VMEM footprint of a (rows, cols) tile in native tiling."""
    sub = 8 * (4 // itemsize)          # sublane packing: 8 f32, 16 bf16, 32 i8
    return (pl.cdiv(rows, sub) * sub) * (pl.cdiv(cols, 128) * 128) * itemsize


def _value_detok_kernel(x_ref, w_ref, b_ref, o_ref):
    # x_ref: (b_tile, F)  activation tile, native dtype (f32 / bf16)
    # w_ref: (F, 1)       flattened per-body weights pre-scaled by 1/N
    # b_ref: (1, 1)       f32 SMEM scalar: mean(bias)
    # o_ref: (b_tile, 1)  f32 output tile
    acc = lax.dot_general(
        x_ref[...], w_ref[...],
        dimension_numbers=(((1,), (0,)), ((), ())),
        preferred_element_type=jnp.float32,
        precision=lax.Precision.HIGHEST,
    )                                   # (b_tile, 1); no transpose of the big tile
    o_ref[...] = acc + b_ref[0, 0]


def value_detokenizer(x, weights, bias, *, use_pallas=None, x_buffer_bytes=None):
    """x: (B, N, D), weights: (N, D), bias: (N,)  ->  (B, 1) float32."""
    B, N, D = x.shape
    F = N * D
    itemsize = x.dtype.itemsize

    # ---- layout plumbing (metadata-only reshapes; no HBM padding passes) ----
    x2d = x.reshape(B, F)
    # Fold 1/N into the flattened weight column; keep x's dtype so a bf16
    # activation path stays bf16 end-to-end (kernel is HBM-bound).
    w_col = (weights.astype(jnp.float32) / jnp.float32(N)).reshape(F, 1).astype(x.dtype)
    # Fold the bias into a single f32 scalar: mean over bodies.
    bias_mean = jnp.mean(bias.astype(jnp.float32)).reshape(1, 1)

    if use_pallas is None:
        # Tiny problems: pallas_call launch + pipeline prologue dominates; a
        # fused XLA matvec is strictly faster.
        use_pallas = B * F * itemsize >= (256 * 1024)
    if not use_pallas:
        vals = lax.dot_general(
            x2d, w_col, (((1,), (0,)), ((), ())),
            preferred_element_type=jnp.float32,
            precision=lax.Precision.HIGHEST)
        return vals + bias_mean                          # (B, 1) f32

    # ---- per-generation, bytes-based batch-tile sizing ----------------------
    kind = _device_kind()
    if "v7" in kind:
        default_buf = 8 << 20                            # big tiles, tight VMEM
        semantics = (pltpu.CORE_PARALLEL,)               # use both TCs on v7x
    elif "v5e" in kind or "v5 lite" in kind:
        default_buf = 4 << 20                            # 4 MiB >> 0.35us/step
        semantics = ("parallel",)
    else:                                                # v6e / default
        default_buf = 8 << 20
        semantics = ("parallel",)
    x_buf_target = default_buf if x_buffer_bytes is None else int(x_buffer_bytes)

    row_bytes = F * itemsize
    rows = max(8, (x_buf_target // max(row_bytes, 1)) // 8 * 8)   # multiple of 8
    b_tile = B if rows >= B else rows        # full-extent block is always legal
    grid = (pl.cdiv(B, b_tile),)             # ragged tail -> Pallas boundary block

    # Double-buffered footprint + slack; raise scoped-VMEM above the default so
    # the compiler never silently caps the tile (16/32 MiB defaults).
    vmem_limit = int(
        2 * (_vmem_tile_bytes(b_tile, F, itemsize)
             + _vmem_tile_bytes(F, 1, itemsize)
             + _vmem_tile_bytes(b_tile, 1, 4))
        + (4 << 20))

    cost = pl.CostEstimate(
        flops=int(2 * B * F),
        transcendentals=0,
        bytes_accessed=int(B * F * itemsize + F * itemsize + B * 4 + 4),
    )

    out = pl.pallas_call(
        _value_detok_kernel,
        out_shape=jax.ShapeDtypeStruct((B, 1), jnp.float32),
        grid_spec=pltpu.PrefetchScalarGridSpec(
            num_scalar_prefetch=0,
            grid=grid,
            in_specs=[
                pl.BlockSpec((b_tile, F), lambda i: (i, 0)),        # x tile, full F
                pl.BlockSpec((F, 1), lambda i: (0, 0)),             # resident weights
                pl.BlockSpec(memory_space=pltpu.MemorySpace.SMEM),  # bias scalar
            ],
            out_specs=pl.BlockSpec((b_tile, 1), lambda i: (i, 0)),
        ),
        compiler_params=pltpu.CompilerParams(
            dimension_semantics=semantics,
            vmem_limit_bytes=vmem_limit,
        ),
        cost_estimate=cost,
    )(x2d, w_col, bias_mean)
    return out


def _reference(x, weights, bias):
    # Pure-JAX, elementwise f32 reference of the PyTorch forward (no matmul).
    xf = x.astype(jnp.float32)
    wf = weights.astype(jnp.float32)
    bf = bias.astype(jnp.float32)
    vals = jnp.sum(xf * wf[None, :, :], axis=-1) + bf[None, :]
    return jnp.mean(vals, axis=1, keepdims=True)


if __name__ == "__main__":
    # Synthetic config: nbodies = 8 (size of self.map), embedding_dim = 32.
    B, N, D = 2, 8, 32

    key = jax.random.PRNGKey(0)
    kx, kw, kb = jax.random.split(key, 3)

    x = jax.random.normal(kx, (B, N, D), dtype=jnp.float32)

    # Deterministic per-body Linear(D, 1) parameters (PyTorch-style uniform init).
    bound = 1.0 / jnp.sqrt(jnp.float32(D))
    weights = jax.random.uniform(kw, (N, D), minval=-bound, maxval=bound,
                                 dtype=jnp.float32)
    bias = jax.random.uniform(kb, (N,), minval=-bound, maxval=bound,
                              dtype=jnp.float32)

    # Small-shape run, forced through the Pallas kernel (single full-extent tile).
    out = jax.block_until_ready(value_detokenizer(x, weights, bias, use_pallas=True))
    ref = _reference(x, weights, bias)
    assert out.shape == (B, 1)
    assert jnp.allclose(out, ref, atol=1e-4, rtol=1e-4), (out, ref)

    # Multi-tile + ragged-batch boundary-block path (B not a multiple of the
    # tile): shrink the per-buffer byte budget so several grid steps run.
    B2 = 1030
    x2 = jax.random.normal(jax.random.PRNGKey(1), (B2, N, D), dtype=jnp.float32)
    out2 = jax.block_until_ready(
        value_detokenizer(x2, weights, bias, use_pallas=True,
                          x_buffer_bytes=64 * 1024))
    ref2 = _reference(x2, weights, bias)
    assert out2.shape == (B2, 1)
    assert jnp.allclose(out2, ref2, atol=1e-4, rtol=1e-4)

    print("KERNEL_OK")
</pallas_src>

<mosaic_0001>
module attributes {stable_mosaic.version = 11 : i64} {
  func.func @_value_detok_kernel(%arg0: i32, %arg1: memref<2x256xf32, #tpu.memory_space<vmem>>, %arg2: memref<256x1xf32, #tpu.memory_space<vmem>>, %arg3: memref<1x1xf32, #tpu.memory_space<smem>>, %arg4: memref<2x1xf32, #tpu.memory_space<vmem>>) attributes {dimension_semantics = [#tpu.dimension_semantics<parallel>], iteration_bounds = array<i64: 1>, scalar_prefetch = 0 : i64, scratch_operands = 0 : i64, tpu.core_type = #tpu.core_type<tc>, window_params = [{transform_indices = @transform_0, window_bounds = array<i64: 2, 256>}, {pipeline_mode = #tpu.pipeline_mode<synchronous>, transform_indices = @transform_1, window_bounds = array<i64: 256, 1>}, {transform_indices = @transform_2, window_bounds = array<i64: 1, 1>}, {transform_indices = @transform_3, window_bounds = array<i64: 2, 1>}]} {
    %c0 = arith.constant 0 : index
    %c0_0 = arith.constant 0 : index
    %0 = vector.load %arg1[%c0, %c0_0] : memref<2x256xf32, #tpu.memory_space<vmem>>, vector<2x256xf32>
    %c0_1 = arith.constant 0 : index
    %c0_2 = arith.constant 0 : index
    %1 = vector.load %arg2[%c0_1, %c0_2] : memref<256x1xf32, #tpu.memory_space<vmem>>, vector<256x1xf32>
    %cst = arith.constant dense<0.000000e+00> : vector<2x1xf32>
    %2 = tpu.matmul %0, %1, %cst {dimension_numbers = #tpu.dot_dimension_numbers<[1], [0], [0], [1], [0, 0, 1, 1], [], []>, precision = #tpu.contract_precision<fp32>} : vector<2x256xf32>, vector<256x1xf32>, vector<2x1xf32> -> vector<2x1xf32>
    %c0_3 = arith.constant 0 : index
    %c0_4 = arith.constant 0 : index
    %3 = memref.load %arg3[%c0_3, %c0_4] : memref<1x1xf32, #tpu.memory_space<smem>>
    %4 = vector.broadcast %3 : f32 to vector<2x1xf32>
    %5 = arith.addf %2, %4 : vector<2x1xf32>
    %c0_5 = arith.constant 0 : index
    %c0_6 = arith.constant 0 : index
    %6 = vector.load %arg4[%c0_5, %c0_6] : memref<2x1xf32, #tpu.memory_space<vmem>>, vector<2x1xf32>
    tpu.vector_store %arg4[%c0_5, %c0_6], %5 {strides = array<i32>} : memref<2x1xf32, #tpu.memory_space<vmem>>, vector<2x1xf32>,
    return
  }
  func.func @transform_0(%arg0: i32) -> (i32, i32) {
    %c0_i32 = arith.constant 0 : i32
    %c0_i32_0 = arith.constant 0 : i32
    return %arg0, %c0_i32 : i32, i32
  }
  func.func @transform_1(%arg0: i32) -> (i32, i32) {
    %c0_i32 = arith.constant 0 : i32
    %c0_i32_0 = arith.constant 0 : i32
    %c0_i32_1 = arith.constant 0 : i32
    return %c0_i32, %c0_i32_0 : i32, i32
  }
  func.func @transform_2(%arg0: i32) -> (i32, i32) {
    %c0_i32 = arith.constant 0 : i32
    %c0_i32_0 = arith.constant 0 : i32
    %c0_i32_1 = arith.constant 0 : i32
    return %c0_i32, %c0_i32_0 : i32, i32
  }
  func.func @transform_3(%arg0: i32) -> (i32, i32) {
    %c0_i32 = arith.constant 0 : i32
    %c0_i32_0 = arith.constant 0 : i32
    return %arg0, %c0_i32 : i32, i32
  }
}

</mosaic_0001>

<bundles_post_ra>
// kernel: tpu_custom_call.1
= control target key start
LH: loop header
LB: loop body
LE: loop exit
PB: predicated region body
PF: predicated region fallthrough
CT: control target
= control target key end

     0   :  { %vm923_vm0 = vcmask 1024   ;;  %s1857_s1 = inlined_call_operand.vmem [shape: f32[256,1], index: 1, kind: input, shape index: {}]   ;;  %s1858_s0 = inlined_call_operand.vmem [shape: f32[2,256], index: 0, kind: input, shape index: {}]   ;;  %s1859_s2 = inlined_call_operand.<no memory space> [shape: f32[1,1], index: 2, kind: input, shape index: {}]   ;;  %s1860_s3 = inlined_call_operand.vmem [shape: f32[2,1], index: 3, kind: output, shape index: {}]  }
   0x1   :  { %v32_v0 = vld [vmem:[%s1857_s1 + $0x80] sm:$0xff]  ;;  %v33_v1 = vld [vmem:[%s1857_s1 + $0x88] sm:$0xff]  ;;  %v34_v7 = vld [vmem:[%s1857_s1 + $0x90] sm:$0xff] }
   0x2   :  { %v16_v2 = vld [vmem:[%s1857_s1] sm:$0xff]  ;;  %v110_v3 = vand.u32 4294901760, %v32_v0  ;;  %v113_v4 = vand.u32 4294901760, %v33_v1  ;;  %v17_v5 = vld [vmem:[%s1857_s1 + $0x8] sm:$0xff]  ;;  %v35_v8 = vld [vmem:[%s1857_s1 + $0x98] sm:$0xff]  ;;  %v116_v10 = vand.u32 4294901760, %v34_v7 }
   0x3   :  { %v62_v6 = vand.u32 4294901760, %v16_v2  ;;  %v65_v9 = vand.u32 4294901760, %v17_v5  ;;  %v119_v11 = vand.u32 4294901760, %v35_v8  ;;  %v18_v12 = vld [vmem:[%s1857_s1 + $0x10] sm:$0xff]  ;;  %v19_v13 = vld [vmem:[%s1857_s1 + $0x18] sm:$0xff]  ;;  %v36_v18 = vld [vmem:[%s1857_s1 + $0xa0] sm:$0xff] }
   0x4   :  { %v1376_v14 = vpack.c.bf16 %v113_v4, %v110_v3  ;;  %v68_v16 = vand.u32 4294901760, %v18_v12  ;;  %v71_v17 = vand.u32 4294901760, %v19_v13  ;;  %v37_v19 = vld [vmem:[%s1857_s1 + $0xa8] sm:$0xff]  ;;  %v20_v23 = vld [vmem:[%s1857_s1 + $0x20] sm:$0xff]  ;;  %v1399_v25 = vsub.f32 %v34_v7, %v116_v10  ;;  %v38_v37 = vld [vmem:[%s1857_s1 + $0xb0] sm:$0xff] }
   0x5   :  { %v1378_v15 = vsub.f32 %v16_v2, %v62_v6  ;;  %v1386_v20 = vpack.c.bf16 %v65_v9, %v62_v6  ;;  %v1388_v21 = vsub.f32 %v17_v5, %v65_v9  ;;  %v1390_v22 = vpack.c.bf16 %v119_v11, %v116_v10  ;;  %v21_v24 = vld [vmem:[%s1857_s1 + $0x28] sm:$0xff]  ;;  %v39_v42 = vld [vmem:[%s1857_s1 + $0xb8] sm:$0xff]  ;;  %v22_v55 = vld [vmem:[%s1857_s1 + $0x30] sm:$0xff] }
   0x6   :  { %1141 = vmatprep.subr.bf16.mxu0 %v1376_v14  ;;  %v1401_v26 = vsub.f32 %v35_v8, %v119_v11  ;;  %v1403_v27 = vpack.c.bf16 %v71_v17, %v68_v16  ;;  %v1405_v28 = vsub.f32 %v18_v12, %v68_v16  ;;  %v122_v29 = vand.u32 4294901760, %v36_v18  ;;  %v23_v56 = vld [vmem:[%s1857_s1 + $0x38] sm:$0xff]  ;;  %v40_v5 = vld [vmem:[%s1857_s1 + $0xc0] sm:$0xff]  ;;  %v41_v6 = vld [vmem:[%s1857_s1 + $0xc8] sm:$0xff] }
   0x7   :  { %1143 = vmatpush3.bf16.msra.mxu0 %v1386_v20  ;;  %v125_v30 = vand.u32 4294901760, %v37_v19  ;;  %v1408_v31 = vsub.f32 %v32_v0, %v110_v3  ;;  %v1410_v32 = vsub.f32 %v33_v1, %v113_v4  ;;  %v74_v33 = vand.u32 4294901760, %v20_v23  ;;  %v24_v11 = vld [vmem:[%s1857_s1 + $0x40] sm:$0xff] }
   0x8   :  { %1145 = vmatprep.subr.bf16.mxu0 %v1390_v22  ;;  %v77_v34 = vand.u32 4294901760, %v21_v24  ;;  %v1877_v35 = vand.u32 4294901760, %v1378_v15  ;;  %v1876_v36 = vand.u32 4294901760, %v1388_v21  ;;  %v1418_v38 = vsub.f32 %v19_v13, %v71_v17 }
   0x9   :  { %v1420_v39 = vpack.c.bf16 %v125_v30, %v122_v29  ;;  %v1422_v40 = vsub.f32 %v36_v18, %v122_v29  ;;  %v1881_v41 = vand.u32 4294901760, %v1408_v31  ;;  %v1428_v43 = vsub.f32 %v37_v19, %v125_v30  ;;  %v25_v29 = vld [vmem:[%s1857_s1 + $0x48] sm:$0xff] }
   0xa   :  { %v1879_v44 = vand.u32 4294901760, %v1410_v32  ;;  %v1431_v45 = vpack.c.bf16 %v77_v34, %v74_v33  ;;  %v1433_v46 = vsub.f32 %v20_v23, %v74_v33  ;;  %v177_v48 = vsub.f32 %v1378_v15, %v1877_v35 }
   0xb   :  { %1147 = vmatpush3.bf16.msra.mxu0 %v1403_v27  ;;  %v289_v47 = vsub.f32 %v1408_v31, %v1881_v41  ;;  %v184_v49 = vsub.f32 %v1388_v21, %v1876_v36  ;;  %v128_v50 = vand.u32 4294901760, %v38_v37  ;;  %v131_v52 = vand.u32 4294901760, %v39_v42 }
   0xc   :  { %1149 = vmatprep.subr.bf16.mxu0 %v1420_v39  ;;  %v296_v51 = vsub.f32 %v1410_v32, %v1879_v44  ;;  %v1874_v53 = vand.u32 4294901760, %v1399_v25  ;;  %v1873_v54 = vand.u32 4294901760, %v1401_v26  ;;  %v1457_v58 = vsub.f32 %v21_v24, %v77_v34 }
   0xd   :  { %v290_v57 = vand.u32 4294901760, %v289_v47  ;;  %v178_v59 = vand.u32 4294901760, %v177_v48  ;;  %v185_v60 = vand.u32 4294901760, %v184_v49  ;;  %v1459_v62 = vpack.c.bf16 %v131_v52, %v128_v50 }
   0xe   :  { %v297_v61 = vand.u32 4294901760, %v296_v51  ;;  %v1461_v63 = vsub.f32 %v38_v37, %v128_v50  ;;  %v303_v0 = vsub.f32 %v1399_v25, %v1874_v53  ;;  %v310_v2 = vsub.f32 %v1401_v26, %v1873_v54 }
   0xf   :  { %1151 = vmatpush3.bf16.msra.mxu0 %v1431_v45  ;;  %v1174_v1 = vpack.c.bf16 %v185_v60, %v178_v59  ;;  %v80_v3 = vand.u32 4294901760, %v22_v55  ;;  %v83_v4 = vand.u32 4294901760, %v23_v56  ;;  %v1872_v9 = vand.u32 4294901760, %v1405_v28 }
  0x10   :  { %v1172_v7 = vpack.c.bf16 %v297_v61, %v290_v57  ;;  %1153 = vmatprep.subr.bf16.mxu0 %v1459_v62  ;;  %v304_v8 = vand.u32 4294901760, %v303_v0  ;;  %v1869_v10 = vand.u32 4294901760, %v1418_v38  ;;  %v1482_v12 = vsub.f32 %v39_v42, %v131_v52  ;;  %v43_v57 = vld [vmem:[%s1857_s1 + $0xd8] sm:$0xff] }
  0x11   :  { %v311_v13 = vand.u32 4294901760, %v310_v2  ;;  %v1484_v16 = vpack.c.bf16 %v83_v4, %v80_v3  ;;  %v1486_v17 = vsub.f32 %v22_v55, %v80_v3  ;;  %v191_v18 = vsub.f32 %v1405_v28, %v1872_v9 }
  0x12   :  { %1173 = vmatprep.subr.bf16.mxu1 %v1172_v7  ;;  %v198_v19 = vsub.f32 %v1418_v38, %v1869_v10  ;;  %v134_v23 = vand.u32 4294901760, %v40_v5  ;;  %v137_v24 = vand.u32 4294901760, %v41_v6  ;;  %v1867_v33 = vand.u32 4294901760, %v1422_v40 }
  0x13   :  { %1175 = vmatpush3.bf16.msra.mxu1 %v1174_v1  ;;  %v1176_v30 = vpack.c.bf16 %v311_v13, %v304_v8  ;;  %1155 = vmatpush3.bf16.msra.mxu0 %v1484_v16  ;;  %v1866_v34 = vand.u32 4294901760, %v1428_v43  ;;  %v86_v37 = vand.u32 4294901760, %v24_v11  ;;  %v1500_v42 = vsub.f32 %v23_v56, %v83_v4  ;;  %v42_v56 = vld [vmem:[%s1857_s1 + $0xd0] sm:$0xff] }
  0x14   :  { %v192_v47 = vand.u32 4294901760, %v191_v18  ;;  %v199_v48 = vand.u32 4294901760, %v198_v19  ;;  %v1502_v49 = vpack.c.bf16 %v137_v24, %v134_v23  ;;  %v1504_v50 = vsub.f32 %v40_v5, %v134_v23  ;;  %v26_v1 = vld [vmem:[%s1857_s1 + $0x50] sm:$0xff]  ;;  %v27_v18 = vld [vmem:[%s1857_s1 + $0x58] sm:$0xff] }
  0x15   :  { %1177 = vmatprep.subr.bf16.mxu1 %v1176_v30  ;;  %v317_v51 = vsub.f32 %v1422_v40, %v1867_v33  ;;  %v324_v52 = vsub.f32 %v1428_v43, %v1866_v34  ;;  %v89_v55 = vand.u32 4294901760, %v25_v29  ;;  %v1519_v60 = vsub.f32 %v41_v6, %v137_v24 }
  0x16   :  { %v1178_v59 = vpack.c.bf16 %v199_v48, %v192_v47  ;;  %1157 = vmatprep.subr.bf16.mxu0 %v1502_v49  ;;  %v1864_v61 = vand.u32 4294901760, %v1433_v46  ;;  %v1863_v0 = vand.u32 4294901760, %v1457_v58  ;;  %v1528_v5 = vsub.f32 %v24_v11, %v86_v37 }
  0x17   :  { %v318_v2 = vand.u32 4294901760, %v317_v51  ;;  %v325_v3 = vand.u32 4294901760, %v324_v52  ;;  %v1526_v4 = vpack.c.bf16 %v89_v55, %v86_v37  ;;  %v140_v8 = vand.u32 4294901760, %v42_v56 }
  0x18   :  { %1179 = vmatpush3.bf16.msra.mxu1 %v1178_v59  ;;  %v205_v6 = vsub.f32 %v1433_v46, %v1864_v61  ;;  %v212_v7 = vsub.f32 %v1457_v58, %v1863_v0  ;;  %v143_v13 = vand.u32 4294901760, %v43_v57  ;;  %v1862_v11 = vand.u32 4294901760, %v1461_v63 }
  0x19   :  { %v1180_v19 = vpack.c.bf16 %v325_v3, %v318_v2  ;;  %1159 = vmatpush3.bf16.msra.mxu0 %v1526_v4  ;;  %v1861_v23 = vand.u32 4294901760, %v1482_v12  ;;  %v92_v24 = vand.u32 4294901760, %v26_v1  ;;  %v1542_v30 = vsub.f32 %v25_v29, %v89_v55  ;;  %v44_v29 = vld [vmem:[%s1857_s1 + $0xe0] sm:$0xff]  ;;  %v45_v55 = vld [vmem:[%s1857_s1 + $0xe8] sm:$0xff] }
  0x1a   :  { %v206_v37 = vand.u32 4294901760, %v205_v6  ;;  %v213_v47 = vand.u32 4294901760, %v212_v7  ;;  %v1544_v48 = vpack.c.bf16 %v143_v13, %v140_v8  ;;  %v1546_v51 = vsub.f32 %v42_v56, %v140_v8  ;;  %v28_v8 = vld [vmem:[%s1857_s1 + $0x60] sm:$0xff] }
  0x1b   :  { %1181 = vmatprep.subr.bf16.mxu1 %v1180_v19  ;;  %v331_v52 = vsub.f32 %v1461_v63, %v1862_v11  ;;  %v338_v59 = vsub.f32 %v1482_v12, %v1861_v23  ;;  %v95_v2 = vand.u32 4294901760, %v27_v18  ;;  %v1561_v56 = vsub.f32 %v43_v57, %v143_v13 }
  0x1c   :  { %v1182_v3 = vpack.c.bf16 %v213_v47, %v206_v37  ;;  %1161 = vmatprep.subr.bf16.mxu0 %v1544_v48  ;;  %v1865_v6 = vand.u32 4294901760, %v1486_v17  ;;  %v1868_v7 = vand.u32 4294901760, %v1500_v42  ;;  %v1570_v0 = vsub.f32 %v26_v1, %v92_v24 }
  0x1d   :  { %v332_v19 = vand.u32 4294901760, %v331_v52  ;;  %v339_v23 = vand.u32 4294901760, %v338_v59  ;;  %v1568_v11 = vpack.c.bf16 %v95_v2, %v92_v24  ;;  %v146_v37 = vand.u32 4294901760, %v44_v29  ;;  %v29_v52 = vld [vmem:[%s1857_s1 + $0x68] sm:$0xff] }
  0x1e   :  { %1183 = vmatpush3.bf16.msra.mxu1 %v1182_v3  ;;  %v219_v57 = vsub.f32 %v1486_v17, %v1865_v6  ;;  %v226_v13 = vsub.f32 %v1500_v42, %v1868_v7  ;;  %v149_v47 = vand.u32 4294901760, %v45_v55  ;;  %v1871_v1 = vand.u32 4294901760, %v1504_v50 }
  0x1f   :  { %v1184_v59 = vpack.c.bf16 %v339_v23, %v332_v19  ;;  %1163 = vmatpush3.bf16.msra.mxu0 %v1568_v11  ;;  %v1870_v24 = vand.u32 4294901760, %v1519_v60  ;;  %v98_v3 = vand.u32 4294901760, %v28_v8  ;;  %v1584_v61 = vsub.f32 %v27_v18, %v95_v2  ;;  %v46_v18 = vld [vmem:[%s1857_s1 + $0xf0] sm:$0xff]  ;;  %v47_v2 = vld [vmem:[%s1857_s1 + $0xf8] sm:$0xff] }
  0x20   :  { %v220_v6 = vand.u32 4294901760, %v219_v57  ;;  %v227_v34 = vand.u32 4294901760, %v226_v13  ;;  %v1586_v33 = vpack.c.bf16 %v149_v47, %v146_v37  ;;  %v1588_v7 = vsub.f32 %v44_v29, %v146_v37 }
  0x21   :  { %1185 = vmatprep.subr.bf16.mxu1 %v1184_v59  ;;  %v345_v23 = vsub.f32 %v1504_v50, %v1871_v1  ;;  %v352_v19 = vsub.f32 %v1519_v60, %v1870_v24  ;;  %v101_v10 = vand.u32 4294901760, %v29_v52  ;;  %v1603_v29 = vsub.f32 %v45_v55, %v149_v47  ;;  %v30_v59 = vld [vmem:[%s1857_s1 + $0x70] sm:$0xff] }
  0x22   :  { %1904 = vst [vmem:[#allocation3_spill] sm:$0xff] %v1586_v33  ;;  %v1186_v57 = vpack.c.bf16 %v227_v34, %v220_v6  ;;  %1165 = vmatprep.subr.bf16.mxu0 %v1586_v33  ;;  %v1875_v13 = vand.u32 4294901760, %v1528_v5  ;;  %v1878_v37 = vand.u32 4294901760, %v1542_v30  ;;  %v1612_v54 = vsub.f32 %v28_v8, %v98_v3 }
  0x23   :  { %v346_v24 = vand.u32 4294901760, %v345_v23  ;;  %v353_v1 = vand.u32 4294901760, %v352_v19  ;;  %v1610_v9 = vpack.c.bf16 %v101_v10, %v98_v3  ;;  %v152_v6 = vand.u32 4294901760, %v46_v18  ;;  %v31_v23 = vld [vmem:[%s1857_s1 + $0x78] sm:$0xff] }
  0x24   :  { %1187 = vmatpush3.bf16.msra.mxu1 %v1186_v57  ;;  %v233_v34 = vsub.f32 %v1528_v5, %v1875_v13  ;;  %v240_v55 = vsub.f32 %v1542_v30, %v1878_v37  ;;  %v155_v47 = vand.u32 4294901760, %v47_v2  ;;  %v1880_v8 = vand.u32 4294901760, %v1546_v51 }
  0x25   :  { %1905 = vst [vmem:[#allocation4_spill] sm:$0xff] %v1610_v9  ;;  %v1188_v19 = vpack.c.bf16 %v353_v1, %v346_v24  ;;  %1167 = vmatpush3.bf16.msra.mxu0 %v1610_v9  ;;  %v1882_v3 = vand.u32 4294901760, %v1561_v56  ;;  %v104_v57 = vand.u32 4294901760, %v30_v59  ;;  %v1626_v53 = vsub.f32 %v29_v52, %v101_v10 }
  0x26   :  { %v234_v13 = vand.u32 4294901760, %v233_v34  ;;  %v241_v36 = vand.u32 4294901760, %v240_v55  ;;  %v1628_v35 = vpack.c.bf16 %v155_v47, %v152_v6  ;;  %v1630_v37 = vsub.f32 %v46_v18, %v152_v6  ;;  %v929_v10 = vld.sshfl [vmem:[%s1858_s0] sm:$0x33 pattern:$0x76325410] }
  0x27   :  { %1189 = vmatprep.subr.bf16.mxu1 %v1188_v19  ;;  %v359_v1 = vsub.f32 %v1546_v51, %v1880_v8  ;;  %v366_v24 = vsub.f32 %v1561_v56, %v1882_v3  ;;  %v107_v44 = vand.u32 4294901760, %v31_v23  ;;  %v1642_v34 = vsub.f32 %v47_v2, %v155_v47 }
  0x28   :  { %1906 = vst [vmem:[#allocation5_spill] sm:$0xff] %v1628_v35  ;;  %v1190_v52 = vpack.c.bf16 %v241_v36, %v234_v13  ;;  %1169 = vmatprep.subr.bf16.mxu0 %v1628_v35  ;;  %v1883_v18 = vand.u32 4294901760, %v1570_v0  ;;  %v1886_v55 = vand.u32 4294901760, %v1584_v61  ;;  %v1648_v41 = vsub.f32 %v30_v59, %v104_v57 }
  0x29   :  { %v360_v6 = vand.u32 4294901760, %v359_v1  ;;  %v367_v19 = vand.u32 4294901760, %v366_v24  ;;  %v1646_v8 = vpack.c.bf16 %v107_v44, %v104_v57  ;;  %v58_v2 = vcombine.high %v929_v10, %v929_v10 }
  0x2a   :  { %1191 = vmatpush3.bf16.msra.mxu1 %v1190_v52  ;;  %v247_v3 = vsub.f32 %v1570_v0, %v1883_v18  ;;  %v254_v36 = vsub.f32 %v1584_v61, %v1886_v55  ;;  %v1656_v13 = vand.u32 4294901760, %v929_v10  ;;  %v1889_v1 = vand.u32 4294901760, %v1588_v7 }
  0x2b   :  { %1907 = vst [vmem:[#allocation6_spill] sm:$0xff] %v1646_v8  ;;  %v1192_v47 = vpack.c.bf16 %v367_v19, %v360_v6  ;;  %1171 = vmatpush3.bf16.msra.mxu0 %v1646_v8  ;;  %v1892_v59 = vand.u32 4294901760, %v1603_v29  ;;  %v1204_v57 = vpack.c.bf16 %v1410_v32, %v1408_v31  ;;  %v1663_v18 = vand.u32 4294901760, %v58_v2 }
  0x2c   :  { %v248_v24 = vand.u32 4294901760, %v247_v3  ;;  %v255_v52 = vand.u32 4294901760, %v254_v36  ;;  %v1666_v35 = vsub.f32 %v929_v10, %v1656_v13  ;;  %v373_v6 = vsub.f32 %v1588_v7, %v1889_v1 }
  0x2d   :  { %1908 = vst [vmem:[#allocation7_spill] sm:$0xff] %v1663_v18  ;;  %1193 = vmatprep.subr.bf16.mxu1 %v1192_v47  ;;  %v380_v19 = vsub.f32 %v1603_v29, %v1892_v59  ;;  %1205 = vmatprep.subr.bf16.mxu0 %v1204_v57  ;;  %v1893_v55 = vand.u32 4294901760, %v1612_v54  ;;  %v1894_v3 = vand.u32 4294901760, %v1626_v53  ;;  %v1676_v36 = vsub.f32 %v31_v23, %v107_v44 }
  0x2e   :  { %1909 = vst [vmem:[#allocation8_spill] sm:$0xff] %v1666_v35  ;;  %v1194_v8 = vpack.c.bf16 %v255_v52, %v248_v24  ;;  %v1679_v10 = vsub.f32 %v58_v2, %v1663_v18  ;;  %v1897_v47 = vand.u32 4294901760, %v1666_v35  ;;  %398 = vmatprep.mubr.f32.mxu1 %v1663_v18  ;;  %v374_v1 = vand.u32 4294901760, %v373_v6 }
  0x2f   :  { %v381_v9 = vand.u32 4294901760, %v380_v19  ;;  %v261_v57 = vsub.f32 %v1612_v54, %v1893_v55  ;;  %v268_v59 = vsub.f32 %v1626_v53, %v1894_v3  ;;  %v1902_v2 = vand.u32 4294901760, %v1630_v37 }
  0x30   :  { %1195 = vmatpush3.bf16.msra.mxu1 %v1194_v8  ;;  %v159_v44 = vand.u32 4294901760, %v1679_v10  ;;  %v166_v23 = vsub.f32 %v1666_v35, %v1897_v47  ;;  %v393_v24 = vand.u32 4294901760, %v1642_v34  ;;  %v1903_v35 = vand.u32 4294901760, %v1648_v41 }
  0x31   :  { %v1196_v52 = vpack.c.bf16 %v381_v9, %v374_v1  ;;  %v262_v6 = vand.u32 4294901760, %v261_v57  ;;  %v269_v19 = vand.u32 4294901760, %v268_v59  ;;  %v387_v3 = vsub.f32 %v1630_v37, %v1902_v2 }
  0x32   :  { %v160_v55 = vsub.f32 %v1679_v10, %v159_v44  ;;  %v394_v8 = vsub.f32 %v1642_v34, %v393_v24  ;;  %v167_v18 = vand.u32 4294901760, %v166_v23  ;;  %v281_v33 = vand.u32 4294901760, %v1676_v36 }
  0x33   :  { %1197 = vmatprep.subr.bf16.mxu1 %v1196_v52  ;;  %v1198_v47 = vpack.c.bf16 %v269_v19, %v262_v6  ;;  %v1206_v1 = vpack.c.bf16 %v1388_v21, %v1378_v15  ;;  %v388_v59 = vand.u32 4294901760, %v387_v3  ;;  %v1208_v2 = vpack.c.bf16 %v1401_v26, %v1399_v25 }
  0x34   :  { %v161_v9 = vand.u32 4294901760, %v160_v55  ;;  %v395_v57 = vand.u32 4294901760, %v394_v8  ;;  %v275_v52 = vsub.f32 %v1648_v41, %v1903_v35  ;;  %v282_v23 = vsub.f32 %v1676_v36, %v281_v33 }
  0x35   :  { %1199 = vmatpush3.bf16.msra.mxu1 %v1198_v47  ;;  %v1210_v3 = vpack.c.bf16 %v1418_v38, %v1405_v28  ;;  %v1212_v47 = vpack.c.bf16 %v1428_v43, %v1422_v40  ;;  %v1214_v35 = vpack.c.bf16 %v1457_v58, %v1433_v46 }
  0x36   :  { %162 = vmatprep.mubr.f32.mxu0 %v161_v9  ;;  %v1200_v6 = vpack.c.bf16 %v395_v57, %v388_v59  ;;  %v276_v55 = vand.u32 4294901760, %v275_v52  ;;  %v283_v19 = vand.u32 4294901760, %v282_v23  ;;  %v1910_v9 = vand.u32 4294901760, %v1408_v31 }
  0x37   :  { %168 = vmatmul.mubr.f32.vlgmr.msra.gmra.mrb[0].mxu0 %v167_v18  ;;  %v1911_v18 = vand.u32 4294901760, %v1410_v32  ;;  %v1913_v57 = vand.u32 4294901760, %v1388_v21  ;;  %v1914_v23 = vand.u32 4294901760, %v1399_v25  ;;  %v1918_v31 = vand.u32 4294901760, %v1422_v40 }
  0x38   :  { %1207 = vmatpush3.bf16.msra.mxu0 %v1206_v1  ;;  %1201 = vmatprep.subr.bf16.mxu1 %v1200_v6  ;;  %v1202_v8 = vpack.c.bf16 %v283_v19, %v276_v55  ;;  %v1912_v1 = vand.u32 4294901760, %v1378_v15  ;;  %v1916_v55 = vand.u32 4294901760, %v1405_v28  ;;  %v1917_v19 = vand.u32 4294901760, %v1418_v38 }
  0x39   :  { %1209 = vmatprep.subr.bf16.mxu0 %v1208_v2  ;;  %535 = vmatprep.mubr.f32.mxu0 %v1679_v10  ;;  %v1268_v59 = vpack.c.bf16 %v1911_v18, %v1910_v9  ;;  %v1915_v2 = vand.u32 4294901760, %v1401_v26  ;;  %v1919_v32 = vand.u32 4294901760, %v1428_v43  ;;  %v1920_v15 = vand.u32 4294901760, %v1433_v46 }
  0x3a   :  { %v1270_v52 = vpack.c.bf16 %v1913_v57, %v1912_v1  ;;  %v1274_v10 = vpack.c.bf16 %v1917_v19, %v1916_v55  ;;  %1203 = vmatpush3.bf16.msra.mxu1 %v1202_v8  ;;  %v1921_v21 = vand.u32 4294901760, %v1457_v58  ;;  %v1922_v25 = vand.u32 4294901760, %v1461_v63 }
  0x3b   :  { %v1272_v6 = vpack.c.bf16 %v1915_v2, %v1914_v23  ;;  %v1276_v9 = vpack.c.bf16 %v1919_v32, %v1918_v31  ;;  %v1923_v26 = vand.u32 4294901760, %v1482_v12  ;;  %v1924_v28 = vand.u32 4294901760, %v1486_v17  ;;  %1237 = vmatprep.subr.bf16.mxu1 %v1376_v14 }
  0x3c   :  { %v1278_v18 = vpack.c.bf16 %v1921_v21, %v1920_v15  ;;  %v1925_v38 = vand.u32 4294901760, %v1500_v42  ;;  %v1926_v40 = vand.u32 4294901760, %v1504_v50  ;;  %v1927_v43 = vand.u32 4294901760, %v1519_v60  ;;  %1211 = vmatpush3.bf16.msra.mxu0 %v1210_v3 }
  0x3d   :  { %v1280_v1 = vpack.c.bf16 %v1923_v26, %v1922_v25  ;;  %v1928_v46 = vand.u32 4294901760, %v1528_v5  ;;  %v1929_v58 = vand.u32 4294901760, %v1542_v30  ;;  %v1930_v2 = vand.u32 4294901760, %v1546_v51  ;;  %1213 = vmatprep.subr.bf16.mxu0 %v1212_v47  ;;  %400 = vmatmul.mubr.f32.vlgmr.msra.gmra.mrb[0].mxu1 %v1656_v13 }
  0x3e   :  { %v1282_v57 = vpack.c.bf16 %v1925_v38, %v1924_v28  ;;  %v1284_v8 = vpack.c.bf16 %v1927_v43, %v1926_v40  ;;  %v1931_v55 = vand.u32 4294901760, %v1561_v56  ;;  %v1932_v31 = vand.u32 4294901760, %v1570_v0  ;;  %1239 = vmatpush3.bf16.msra.mxu1 %v1386_v20  ;;  %642 = vmatprep.mubr.f32.mxu1 %v159_v44 }
  0x3f   :  { %v1286_v23 = vpack.c.bf16 %v1929_v58, %v1928_v46  ;;  %v1933_v32 = vand.u32 4294901760, %v1584_v61  ;;  %v1216_v3 = vpack.c.bf16 %v1482_v12, %v1461_v63  ;;  %v1934_v21 = vand.u32 4294901760, %v1612_v54  ;;  %1241 = vmatprep.subr.bf16.mxu1 %v1390_v22 }
  0x40   :  { %v1288_v19 = vpack.c.bf16 %v1931_v55, %v1930_v2  ;;  %v1935_v25 = vand.u32 4294901760, %v1626_v53  ;;  %1215 = vmatpush3.bf16.msra.mxu0 %v1214_v35  ;;  %v1218_v47 = vpack.c.bf16 %v1500_v42, %v1486_v17  ;;  %v1220_v63 = vpack.c.bf16 %v1519_v60, %v1504_v50 }
  0x41   :  { %v1770_v15 = vpack.c.bf16 %v1933_v32, %v1932_v31  ;;  %1217 = vmatprep.subr.bf16.mxu0 %v1216_v3  ;;  %v1222_v12 = vpack.c.bf16 %v1542_v30, %v1528_v5  ;;  %v1224_v35 = vpack.c.bf16 %v1561_v56, %v1546_v51  ;;  %v1226_v17 = vpack.c.bf16 %v1584_v61, %v1570_v0  ;;  %v1936_v0 = vld [vmem:[#allocation3_spill] sm:$0xff]  ;;  %v1939_v5 = vld [vmem:[#allocation5_spill] sm:$0xff]  ;;  %v1941_v51 = vld [vmem:[#allocation6_spill] sm:$0xff] }
  0x42   :  { %v1778_v26 = vpack.c.bf16 %v1935_v25, %v1934_v21  ;;  %1243 = vmatpush3.bf16.msra.mxu1 %v1403_v27  ;;  %v1228_v42 = vpack.c.bf16 %v1603_v29, %v1588_v7  ;;  %v1230_v50 = vpack.c.bf16 %v1626_v53, %v1612_v54  ;;  %v1232_v60 = vpack.c.bf16 %v1642_v34, %v1630_v37  ;;  %v1937_v53 = vld [vmem:[#allocation8_spill] sm:$0xff]  ;;  %v1940_v30 = vld [vmem:[#allocation7_spill] sm:$0xff] }
  0x43   :  { %1245 = vmatprep.subr.bf16.mxu1 %v1420_v39  ;;  %v1234_v61 = vpack.c.bf16 %v1676_v36, %v1648_v41  ;;  %v1938_v54 = vld [vmem:[#allocation4_spill] sm:$0xff]  ;;  %v1942_v56 = vand.u32 4294901760, %v1937_v53 }
  0x44   :  { %1219 = vmatpush3.bf16.msra.mxu0 %v1218_v47 }
  0x45   :  { %1221 = vmatprep.subr.bf16.mxu0 %v1220_v63 }
  0x46   :  { %1247 = vmatpush3.bf16.msra.mxu1 %v1431_v45 }
  0x47   :  { %1249 = vmatprep.subr.bf16.mxu1 %v1459_v62 }
  0x48   :  { %1223 = vmatpush3.bf16.msra.mxu0 %v1222_v12 }
  0x49   :  { %1225 = vmatprep.subr.bf16.mxu0 %v1224_v35 }
  0x4a   :  { %1251 = vmatpush3.bf16.msra.mxu1 %v1484_v16 }
  0x4b   :  { %1253 = vmatprep.subr.bf16.mxu1 %v1502_v49 }
  0x4c   :  { %1227 = vmatpush3.bf16.msra.mxu0 %v1226_v17 }
  0x4d   :  { %1229 = vmatprep.subr.bf16.mxu0 %v1228_v42 }
  0x4e   :  { %1255 = vmatpush3.bf16.msra.mxu1 %v1526_v4 }
  0x4f   :  { %1257 = vmatprep.subr.bf16.mxu1 %v1544_v48 }
  0x50   :  { %1231 = vmatpush3.bf16.msra.mxu0 %v1230_v50 }
  0x51   :  { %1233 = vmatprep.subr.bf16.mxu0 %v1232_v60 }
  0x52   :  { %1259 = vmatpush3.bf16.msra.mxu1 %v1568_v11 }
  0x53   :  { %1261 = vmatprep.subr.bf16.mxu1 %v1936_v0 }
  0x54   :  { %1235 = vmatpush3.bf16.msra.mxu0 %v1234_v61 }
  0x55   :  { %1269 = vmatprep.subr.bf16.mxu0 %v1268_v59 }
  0x56   :  { %1263 = vmatpush3.bf16.msra.mxu1 %v1938_v54 }
  0x57   :  { %538 = vmatmul.mubr.f32.vlgmr.msra.gmra.mrb[2].mxu0 %v1937_v53  ;;  %1265 = vmatprep.subr.bf16.mxu1 %v1939_v5 }
  0x58   :  { %1271 = vmatpush3.bf16.msra.mxu0 %v1270_v52  ;;  %812 = vmatprep.mubr.f32.mxu0 %v1940_v30 }
  0x59   :  { %1273 = vmatprep.subr.bf16.mxu0 %v1272_v6 }
  0x5a   :  { %1267 = vmatpush3.bf16.msra.mxu1 %v1941_v51 }
  0x5b   :  { %1301 = vmatprep.subr.bf16.mxu1 %v1376_v14  ;;  %v1943_v14 = vand.u32 4294901760, %v1588_v7 }
  0x5c   :  { %1275 = vmatpush3.bf16.msra.mxu0 %v1274_v10 }
  0x5d   :  { %1277 = vmatprep.subr.bf16.mxu0 %v1276_v9  ;;  %646 = vmatmul.mubr.f32.vlgmr.msra.gmra.mrb[2].mxu1 %v1942_v56 }
  0x5e   :  { %1303 = vmatpush3.bf16.msra.mxu1 %v1386_v20  ;;  %916 = vmatprep.mubr.f32.mxu1 %v1940_v30  ;;  %v1944_v20 = vand.u32 4294901760, %v1603_v29 }
  0x5f   :  { %1305 = vmatprep.subr.bf16.mxu1 %v1390_v22  ;;  %v1945_v22 = vand.u32 4294901760, %v1630_v37 }
  0x60   :  { %1279 = vmatpush3.bf16.msra.mxu0 %v1278_v18  ;;  %v1292_v44 = vpack.c.bf16 %v1944_v20, %v1943_v14 }
  0x61   :  { %1281 = vmatprep.subr.bf16.mxu0 %v1280_v1 }
  0x62   :  { %1307 = vmatpush3.bf16.msra.mxu1 %v1403_v27  ;;  %v1296_v27 = vpack.c.bf16 %v393_v24, %v1945_v22 }
  0x63   :  { %1309 = vmatprep.subr.bf16.mxu1 %v1420_v39  ;;  %v1946_v39 = vand.u32 4294901760, %v1648_v41 }
  0x64   :  { %1283 = vmatpush3.bf16.msra.mxu0 %v1282_v57 }
  0x65   :  { %1285 = vmatprep.subr.bf16.mxu0 %v1284_v8 }
  0x66   :  { %1311 = vmatpush3.bf16.msra.mxu1 %v1431_v45  ;;  %v1298_v45 = vpack.c.bf16 %v281_v33, %v1946_v39  ;;  %v49_v33 = vstv %s1859_s2 }
  0x67   :  { %1313 = vmatprep.subr.bf16.mxu1 %v1459_v62 }
  0x68   :  { %1287 = vmatpush3.bf16.msra.mxu0 %v1286_v23 }
  0x69   :  { %1289 = vmatprep.subr.bf16.mxu0 %v1288_v19 }
  0x6a   :  { %1315 = vmatpush3.bf16.msra.mxu1 %v1484_v16 }
  0x6b   :  { %1317 = vmatprep.subr.bf16.mxu1 %v1502_v49 }
  0x6c   :  { %1291 = vmatpush3.bf16.msra.mxu0 %v1770_v15 }
  0x6d   :  { %1293 = vmatprep.subr.bf16.mxu0 %v1292_v44 }
  0x6e   :  { %1319 = vmatpush3.bf16.msra.mxu1 %v1526_v4 }
  0x6f   :  { %1321 = vmatprep.subr.bf16.mxu1 %v1544_v48 }
  0x70   :  { %1295 = vmatpush3.bf16.msra.mxu0 %v1778_v26 }
  0x71   :  { %1297 = vmatprep.subr.bf16.mxu0 %v1296_v27 }
  0x72   :  { %1323 = vmatpush3.bf16.msra.mxu1 %v1568_v11 }
  0x73   :  { %1325 = vmatprep.subr.bf16.mxu1 %v1936_v0 }
  0x74   :  { %1299 = vmatpush3.bf16.msra.mxu0 %v1298_v45 }
  0x76   :  { %1327 = vmatpush3.bf16.msra.mxu1 %v1938_v54 }
  0x77   :  { %814 = vmatmul.mubr.f32.vlgmr.msra.gmra.mrb[4].mxu0 %v1656_v13  ;;  %1329 = vmatprep.subr.bf16.mxu1 %v1939_v5 }
  0x7a   :  { %1331 = vmatpush3.bf16.msra.mxu1 %v1941_v51 }
  0x7d   :  { %918 = vmatmul.mubr.f32.vlgmr.msra.gmra.mrb[4].mxu1 %v1656_v13 }
 0x10a   :  { %v962_v41 = vpop.f32.mrb[0].mxu0 }
 0x10b   :  { %v963_v62 = vpop.f32.mrb[1].mxu0 }
 0x10c   :  { %v964_v16 = vadd.f32 %v963_v62, %v962_v41 }
 0x10e   :  { %v170_v49 = vadd.f32 %v964_v16, %v49_v33 }
 0x110   :  { %v997_v4 = vpop.f32.mrb[0].mxu1 }
 0x111   :  { %v998_v11 = vpop.f32.mrb[1].mxu1 }
 0x112   :  { %v999_v48 = vadd.f32 %v998_v11, %v997_v4 }
 0x114   :  { %v402_v7 = vadd.f32 %v999_v48, %v170_v49 }
 0x12a   :  { %v1032_v29 = vpop.f32.mrb[2].mxu0 }
 0x12b   :  { %v1033_v37 = vpop.f32.mrb[3].mxu0 }
 0x12c   :  { %v1034_v34 = vadd.f32 %v1033_v37, %v1032_v29 }
 0x12e   :  { %v540_v36 = vadd.f32 %v1034_v34, %v402_v7 }
 0x130   :  { %v1067_v24 = vpop.f32.mrb[2].mxu1 }
 0x131   :  { %v1068_v59 = vpop.f32.mrb[3].mxu1 }
 0x132   :  { %v1069_v52 = vadd.f32 %v1068_v59, %v1067_v24 }
 0x134   :  { %v648_v13 = vadd.f32 %v1069_v52, %v540_v36 }
 0x14a   :  { %v1102_v6 = vpop.f32.mrb[4].mxu0 }
 0x14b   :  { %v1103_v10 = vpop.f32.mrb[5].mxu0 }
 0x14c   :  { %v1104_v9 = vadd.f32 %v1103_v10, %v1102_v6 }
 0x14e   :  { %v816_v18 = vadd.f32 %v1104_v9, %v648_v13 }
 0x150   :  { %v1137_v1 = vpop.f32.mrb[4].mxu1 }
 0x151   :  { %v1138_v28 = vpop.f32.mrb[5].mxu1 }
 0x152   :  { %v1139_v38 = vadd.f32 %v1138_v28, %v1137_v1 }
 0x154   :  { %v920_v57 = vadd.f32 %v1139_v38, %v816_v18 }
 0x156   :  { %924 = vst.msk [vmem:[%s1860_s3] sm:$0x3] %vm923_vm0, %v920_v57 }

</bundles_post_ra>
